<compile_context>
chip_gen: v7x
topology: tpu7x:2x2x1
jax: 0.10.0
libtpu: 0.0.40
codegen_flags: <defaults>
</compile_context>

<pallas_src>
import jax
import jax.numpy as jnp
from jax.experimental import pallas as pl
from jax.experimental.pallas import tpu as pltpu


def _make_mlp_kernel(dim1, dim2):
    """Kernel factory; dim1/dim2 are static Python ints → loops fully unrolled."""

    def kernel(w1_ref, b1_ref, w2_ref, b2_ref, w3_ref, b3_ref, x_ref, o_ref):
        # x_ref: (2, Rb, 128) feature-major; o_ref: (Rb, 128).
        x0 = x_ref[0]                            # (Rb, 128) dense vregs
        x1 = x_ref[1]                            # (Rb, 128)

        # Layer 1: y1[d] = relu(W1[0,d]*x0 + W1[1,d]*x1 + B1[d])
        y1 = []
        for d in range(dim1):
            acc = w1_ref[0, d] * x0 + w1_ref[1, d] * x1 + b1_ref[d]
            y1.append(jnp.maximum(acc, 0.0))

        # Layer 2: y2[d] = relu(sum_k W2[k,d]*y1[k] + B2[d])
        y2 = []
        for d in range(dim2):
            acc = w2_ref[0, d] * y1[0]
            for k in range(1, dim1):
                acc = acc + w2_ref[k, d] * y1[k]
            y2.append(jnp.maximum(acc + b2_ref[d], 0.0))

        # Layer 3 (output width 1): out = relu(sum_k W3[k,0]*y2[k] + B3[0])
        acc = w3_ref[0, 0] * y2[0]
        for k in range(1, dim2):
            acc = acc + w3_ref[k, 0] * y2[k]
        o_ref[...] = jnp.maximum(acc + b3_ref[0], 0.0)   # dense (Rb, 128) store

    return kernel


# Max block rows (sublane axis of the (2, Rb, 128) block).  Rb = 2048:
#   in  block: 2*2048*128*4 B = 2 MiB,  out block: 2048*128*4 B = 1 MiB
#   double-buffered total ≈ 6 MiB  → fits every chip's default scoped VMEM.
_MAX_BLOCK_ROWS = 2048


def _round_up(a, b):
    return ((a + b - 1) // b) * b


def simplified_nn_forward(inp, W1, B1, W2, B2, W3, B3):
    """Pallas forward pass matching SimplifiedNN_dim2_layer2.forward."""
    x = jnp.asarray(inp, jnp.float32).reshape(-1, 2)       # glue: view(-1, 2)
    N = x.shape[0]
    dim1 = W1.shape[1]
    dim2 = W2.shape[1]

    # ---- tile sizing -------------------------------------------------------
    # R_total 128-row groups; split into >=2 blocks when possible (v7x has two
    # TensorCores), keep block rows a multiple of 8 (sublane tiling) and cap
    # them so double-buffered blocks stay ~6 MiB of VMEM.
    r_total = pl.cdiv(N, 128)
    rb = min(_MAX_BLOCK_ROWS, max(8, _round_up(pl.cdiv(r_total, 2), 8)))
    r_pad = _round_up(r_total, rb)
    n_pad = r_pad * 128
    n_blocks = r_pad // rb

    # ---- feature-major layout: batch rows fill sublanes AND lanes ----------
    xT = x.T                                                # (2, N)
    if n_pad != N:
        xT = jnp.pad(xT, ((0, 0), (0, n_pad - N)))          # padded rows: garbage, sliced off later
    x3 = xT.reshape(2, r_pad, 128)                          # contiguous, free reshape

    smem_spec = pl.BlockSpec(memory_space=pltpu.MemorySpace.SMEM)

    out = pl.pallas_call(
        _make_mlp_kernel(dim1, dim2),
        out_shape=jax.ShapeDtypeStruct((r_pad, 128), jnp.float32),
        grid=(n_blocks,),
        in_specs=[
            smem_spec, smem_spec,                           # W1, B1 (SMEM scalars)
            smem_spec, smem_spec,                           # W2, B2
            smem_spec, smem_spec,                           # W3, B3
            pl.BlockSpec((2, rb, 128), lambda i: (0, i, 0)),  # x: full-vreg blocks
        ],
        out_specs=pl.BlockSpec((rb, 128), lambda i: (i, 0)),
        compiler_params=pltpu.CompilerParams(
            dimension_semantics=("parallel",)),             # shard blocks across TCs (v7x)
    )(jnp.asarray(W1, jnp.float32), jnp.asarray(B1, jnp.float32),
      jnp.asarray(W2, jnp.float32), jnp.asarray(B2, jnp.float32),
      jnp.asarray(W3, jnp.float32), jnp.asarray(B3, jnp.float32),
      x3)

    # Drop row padding (no-op copy when N is already block-aligned), restore (N, 1).
    return out.reshape(n_pad)[:N].reshape(N, 1)


def _reference(inp, W1, B1, W2, B2, W3, B3):
    xr = jnp.asarray(inp, jnp.float32).reshape(-1, 2)
    y1 = jnp.maximum(xr @ W1 + B1, 0.0)
    y2 = jnp.maximum(y1 @ W2 + B2, 0.0)
    return jnp.maximum(y2 @ W3 + B3, 0.0)


if __name__ == "__main__":
    dim1, dim2 = 2, 2
    key = jax.random.PRNGKey(0)
    (k_in, k_in2, k_in3,
     k_w1, k_b1, k_w2, k_b2, k_w3, k_b3) = jax.random.split(key, 9)

    # Deterministic parameter init (shapes from the module's __init__).
    W1 = jax.random.normal(k_w1, (2, dim1), dtype=jnp.float32)
    B1 = jax.random.normal(k_b1, (dim1,), dtype=jnp.float32)
    W2 = jax.random.normal(k_w2, (dim1, dim2), dtype=jnp.float32)
    B2 = jax.random.normal(k_b2, (dim2,), dtype=jnp.float32)
    W3 = jax.random.normal(k_w3, (dim2, 1), dtype=jnp.float32)
    B3 = jax.random.normal(k_b3, (1,), dtype=jnp.float32)

    # Case 1: input (4, 2, 2) -> view(-1, 2) gives N = 8 rows (single block).
    x_in = jax.random.normal(k_in, (4, 2, 2), dtype=jnp.float32)
    out = jax.block_until_ready(
        simplified_nn_forward(x_in, W1, B1, W2, B2, W3, B3))
    ref = _reference(x_in, W1, B1, W2, B2, W3, B3)
    assert out.shape == (8, 1)
    assert jnp.allclose(out, ref, atol=1e-5), "mismatch vs reference (N=8)"

    # Case 2: N = 150 (exercises row padding + valid-row slicing).
    x_in2 = jax.random.normal(k_in2, (150, 2), dtype=jnp.float32)
    out2 = jax.block_until_ready(
        simplified_nn_forward(x_in2, W1, B1, W2, B2, W3, B3))
    ref2 = _reference(x_in2, W1, B1, W2, B2, W3, B3)
    assert out2.shape == (150, 1)
    assert jnp.allclose(out2, ref2, atol=1e-5), "mismatch vs reference (N=150)"

    # Case 3: N = 4000 (multi-block grid: 2 blocks of 16x128 rows, plus padding).
    x_in3 = jax.random.normal(k_in3, (4000, 2), dtype=jnp.float32)
    out3 = jax.block_until_ready(
        simplified_nn_forward(x_in3, W1, B1, W2, B2, W3, B3))
    ref3 = _reference(x_in3, W1, B1, W2, B2, W3, B3)
    assert out3.shape == (4000, 1)
    assert jnp.allclose(out3, ref3, atol=1e-5), "mismatch vs reference (N=4000)"

    print("KERNEL_OK")
</pallas_src>

<mosaic_0001>
module attributes {stable_mosaic.version = 11 : i64} {
  func.func @kernel(%arg0: i32, %arg1: memref<2x2xf32, #tpu.memory_space<smem>>, %arg2: memref<2xf32, #tpu.memory_space<smem>>, %arg3: memref<2x2xf32, #tpu.memory_space<smem>>, %arg4: memref<2xf32, #tpu.memory_space<smem>>, %arg5: memref<2x1xf32, #tpu.memory_space<smem>>, %arg6: memref<1xf32, #tpu.memory_space<smem>>, %arg7: memref<2x8x128xf32, #tpu.memory_space<vmem>>, %arg8: memref<8x128xf32, #tpu.memory_space<vmem>>) attributes {dimension_semantics = [#tpu.dimension_semantics<parallel>], iteration_bounds = array<i64: 1>, scalar_prefetch = 0 : i64, scratch_operands = 0 : i64, tpu.core_type = #tpu.core_type<tc>, window_params = [{transform_indices = @transform_0, window_bounds = array<i64: 2, 2>}, {transform_indices = @transform_1, window_bounds = array<i64: 2>}, {transform_indices = @transform_2, window_bounds = array<i64: 2, 2>}, {transform_indices = @transform_3, window_bounds = array<i64: 2>}, {transform_indices = @transform_4, window_bounds = array<i64: 2, 1>}, {transform_indices = @transform_5, window_bounds = array<i64: 1>}, {transform_indices = @transform_6, window_bounds = array<i64: 2, 8, 128>}, {transform_indices = @transform_7, window_bounds = array<i64: 8, 128>}]} {
    %c0 = arith.constant 0 : index
    %c0_0 = arith.constant 0 : index
    %c0_1 = arith.constant 0 : index
    %0 = vector.load %arg7[%c0, %c0_0, %c0_1] : memref<2x8x128xf32, #tpu.memory_space<vmem>>, vector<1x8x128xf32>
    %1 = vector.shape_cast %0 : vector<1x8x128xf32> to vector<8x128xf32>
    %c1 = arith.constant 1 : index
    %c0_2 = arith.constant 0 : index
    %c0_3 = arith.constant 0 : index
    %2 = vector.load %arg7[%c1, %c0_2, %c0_3] : memref<2x8x128xf32, #tpu.memory_space<vmem>>, vector<1x8x128xf32>
    %3 = vector.shape_cast %2 : vector<1x8x128xf32> to vector<8x128xf32>
    %c0_4 = arith.constant 0 : index
    %c0_5 = arith.constant 0 : index
    %4 = memref.load %arg1[%c0_4, %c0_5] : memref<2x2xf32, #tpu.memory_space<smem>>
    %5 = vector.broadcast %4 : f32 to vector<8x128xf32>
    %6 = arith.mulf %5, %1 : vector<8x128xf32>
    %c1_6 = arith.constant 1 : index
    %c0_7 = arith.constant 0 : index
    %7 = memref.load %arg1[%c1_6, %c0_7] : memref<2x2xf32, #tpu.memory_space<smem>>
    %8 = vector.broadcast %7 : f32 to vector<8x128xf32>
    %9 = arith.mulf %8, %3 : vector<8x128xf32>
    %10 = arith.addf %6, %9 : vector<8x128xf32>
    %c0_8 = arith.constant 0 : index
    %11 = memref.load %arg2[%c0_8] : memref<2xf32, #tpu.memory_space<smem>>
    %12 = vector.broadcast %11 : f32 to vector<8x128xf32>
    %13 = arith.addf %10, %12 : vector<8x128xf32>
    %cst = arith.constant 0.000000e+00 : f32
    %14 = vector.broadcast %cst : f32 to vector<8x128xf32>
    %15 = arith.maximumf %13, %14 : vector<8x128xf32>
    %c0_9 = arith.constant 0 : index
    %c1_10 = arith.constant 1 : index
    %16 = memref.load %arg1[%c0_9, %c1_10] : memref<2x2xf32, #tpu.memory_space<smem>>
    %17 = vector.broadcast %16 : f32 to vector<8x128xf32>
    %18 = arith.mulf %17, %1 : vector<8x128xf32>
    %c1_11 = arith.constant 1 : index
    %c1_12 = arith.constant 1 : index
    %19 = memref.load %arg1[%c1_11, %c1_12] : memref<2x2xf32, #tpu.memory_space<smem>>
    %20 = vector.broadcast %19 : f32 to vector<8x128xf32>
    %21 = arith.mulf %20, %3 : vector<8x128xf32>
    %22 = arith.addf %18, %21 : vector<8x128xf32>
    %c1_13 = arith.constant 1 : index
    %23 = memref.load %arg2[%c1_13] : memref<2xf32, #tpu.memory_space<smem>>
    %24 = vector.broadcast %23 : f32 to vector<8x128xf32>
    %25 = arith.addf %22, %24 : vector<8x128xf32>
    %cst_14 = arith.constant 0.000000e+00 : f32
    %26 = vector.broadcast %cst_14 : f32 to vector<8x128xf32>
    %27 = arith.maximumf %25, %26 : vector<8x128xf32>
    %c0_15 = arith.constant 0 : index
    %c0_16 = arith.constant 0 : index
    %28 = memref.load %arg3[%c0_15, %c0_16] : memref<2x2xf32, #tpu.memory_space<smem>>
    %29 = vector.broadcast %28 : f32 to vector<8x128xf32>
    %30 = arith.mulf %29, %15 : vector<8x128xf32>
    %c1_17 = arith.constant 1 : index
    %c0_18 = arith.constant 0 : index
    %31 = memref.load %arg3[%c1_17, %c0_18] : memref<2x2xf32, #tpu.memory_space<smem>>
    %32 = vector.broadcast %31 : f32 to vector<8x128xf32>
    %33 = arith.mulf %32, %27 : vector<8x128xf32>
    %34 = arith.addf %30, %33 : vector<8x128xf32>
    %c0_19 = arith.constant 0 : index
    %35 = memref.load %arg4[%c0_19] : memref<2xf32, #tpu.memory_space<smem>>
    %36 = vector.broadcast %35 : f32 to vector<8x128xf32>
    %37 = arith.addf %34, %36 : vector<8x128xf32>
    %cst_20 = arith.constant 0.000000e+00 : f32
    %38 = vector.broadcast %cst_20 : f32 to vector<8x128xf32>
    %39 = arith.maximumf %37, %38 : vector<8x128xf32>
    %c0_21 = arith.constant 0 : index
    %c1_22 = arith.constant 1 : index
    %40 = memref.load %arg3[%c0_21, %c1_22] : memref<2x2xf32, #tpu.memory_space<smem>>
    %41 = vector.broadcast %40 : f32 to vector<8x128xf32>
    %42 = arith.mulf %41, %15 : vector<8x128xf32>
    %c1_23 = arith.constant 1 : index
    %c1_24 = arith.constant 1 : index
    %43 = memref.load %arg3[%c1_23, %c1_24] : memref<2x2xf32, #tpu.memory_space<smem>>
    %44 = vector.broadcast %43 : f32 to vector<8x128xf32>
    %45 = arith.mulf %44, %27 : vector<8x128xf32>
    %46 = arith.addf %42, %45 : vector<8x128xf32>
    %c1_25 = arith.constant 1 : index
    %47 = memref.load %arg4[%c1_25] : memref<2xf32, #tpu.memory_space<smem>>
    %48 = vector.broadcast %47 : f32 to vector<8x128xf32>
    %49 = arith.addf %46, %48 : vector<8x128xf32>
    %cst_26 = arith.constant 0.000000e+00 : f32
    %50 = vector.broadcast %cst_26 : f32 to vector<8x128xf32>
    %51 = arith.maximumf %49, %50 : vector<8x128xf32>
    %c0_27 = arith.constant 0 : index
    %c0_28 = arith.constant 0 : index
    %52 = memref.load %arg5[%c0_27, %c0_28] : memref<2x1xf32, #tpu.memory_space<smem>>
    %53 = vector.broadcast %52 : f32 to vector<8x128xf32>
    %54 = arith.mulf %53, %39 : vector<8x128xf32>
    %c1_29 = arith.constant 1 : index
    %c0_30 = arith.constant 0 : index
    %55 = memref.load %arg5[%c1_29, %c0_30] : memref<2x1xf32, #tpu.memory_space<smem>>
    %56 = vector.broadcast %55 : f32 to vector<8x128xf32>
    %57 = arith.mulf %56, %51 : vector<8x128xf32>
    %58 = arith.addf %54, %57 : vector<8x128xf32>
    %c0_31 = arith.constant 0 : index
    %59 = memref.load %arg6[%c0_31] : memref<1xf32, #tpu.memory_space<smem>>
    %60 = vector.broadcast %59 : f32 to vector<8x128xf32>
    %61 = arith.addf %58, %60 : vector<8x128xf32>
    %cst_32 = arith.constant 0.000000e+00 : f32
    %62 = vector.broadcast %cst_32 : f32 to vector<8x128xf32>
    %63 = arith.maximumf %61, %62 : vector<8x128xf32>
    %c0_33 = arith.constant 0 : index
    %c0_34 = arith.constant 0 : index
    %64 = vector.load %arg8[%c0_33, %c0_34] : memref<8x128xf32, #tpu.memory_space<vmem>>, vector<8x128xf32>
    tpu.vector_store %arg8[%c0_33, %c0_34], %63 {strides = array<i32>} : memref<8x128xf32, #tpu.memory_space<vmem>>, vector<8x128xf32>,
    return
  }
  func.func @transform_0(%arg0: i32) -> (i32, i32) {
    %c0_i32 = arith.constant 0 : i32
    %c0_i32_0 = arith.constant 0 : i32
    %c0_i32_1 = arith.constant 0 : i32
    return %c0_i32, %c0_i32_0 : i32, i32
  }
  func.func @transform_1(%arg0: i32) -> i32 {
    %c0_i32 = arith.constant 0 : i32
    %c0_i32_0 = arith.constant 0 : i32
    return %c0_i32 : i32
  }
  func.func @transform_2(%arg0: i32) -> (i32, i32) {
    %c0_i32 = arith.constant 0 : i32
    %c0_i32_0 = arith.constant 0 : i32
    %c0_i32_1 = arith.constant 0 : i32
    return %c0_i32, %c0_i32_0 : i32, i32
  }
  func.func @transform_3(%arg0: i32) -> i32 {
    %c0_i32 = arith.constant 0 : i32
    %c0_i32_0 = arith.constant 0 : i32
    return %c0_i32 : i32
  }
  func.func @transform_4(%arg0: i32) -> (i32, i32) {
    %c0_i32 = arith.constant 0 : i32
    %c0_i32_0 = arith.constant 0 : i32
    %c0_i32_1 = arith.constant 0 : i32
    return %c0_i32, %c0_i32_0 : i32, i32
  }
  func.func @transform_5(%arg0: i32) -> i32 {
    %c0_i32 = arith.constant 0 : i32
    %c0_i32_0 = arith.constant 0 : i32
    return %c0_i32 : i32
  }
  func.func @transform_6(%arg0: i32) -> (i32, i32, i32) {
    %c0_i32 = arith.constant 0 : i32
    %c0_i32_0 = arith.constant 0 : i32
    %c0_i32_1 = arith.constant 0 : i32
    return %c0_i32, %arg0, %c0_i32_0 : i32, i32, i32
  }
  func.func @transform_7(%arg0: i32) -> (i32, i32) {
    %c0_i32 = arith.constant 0 : i32
    %c0_i32_0 = arith.constant 0 : i32
    return %arg0, %c0_i32 : i32, i32
  }
}

</mosaic_0001>

<bundles_post_ra>
// kernel: tpu_custom_call.1
= control target key start
LH: loop header
LB: loop body
LE: loop exit
PB: predicated region body
PF: predicated region fallthrough
CT: control target
= control target key end

     0   :  { %13 = vsyncpa [#allocation5], 0  ;;  %s351_s0 = inlined_call_operand.vmem [shape: f32[2,2], index: 0, kind: input, shape index: {}]   ;;  %s352_s1 = inlined_call_operand.vmem [shape: f32[2], index: 1, kind: input, shape index: {}]   ;;  %s353_s2 = inlined_call_operand.vmem [shape: f32[2,2], index: 2, kind: input, shape index: {}]   ;;  %s354_s3 = inlined_call_operand.vmem [shape: f32[2], index: 3, kind: input, shape index: {}]   ;;  %s355_s4 = inlined_call_operand.vmem [shape: f32[2,1], index: 4, kind: input, shape index: {}]   ;;  %s356_s5 = inlined_call_operand.<no memory space> [shape: f32[1], index: 5, kind: input, shape index: {}]   ;;  %s357_s6 = inlined_call_operand.vmem [shape: f32[2,8,128], index: 6, kind: input, shape index: {}]   ;;  %s358_s7 = inlined_call_operand.hbm [shape: f32[8,128], index: 7, kind: output, shape index: {}]  }
   0x1   :  { %14 = vsyncpa [#allocation7], 0 }
   0x2   :  { %15 = vsyncpa [#allocation10], 0  ;;  %s33_s26 = sshll.u32 %s352_s1, 4  ;;  %s34_s26 = int_to_ptr.vmem [resolvable:$true] %s33_s26 }
   0x3   :  { %16 = vsyncpa [#allocation4], 0  ;;  %s53_s29 = sshll.u32 %s354_s3, 4  ;;  %s179_s30 = scalar_lea.vmem %s34_s26, 16  ;;  %s54_s29 = int_to_ptr.vmem [resolvable:$true] %s53_s29 }
   0x4   :  { %p180_p0 = scmp.ne.s32.totalorder %s34_s26, %s179_s30  ;;  %p184_p1 = scmp.lt.s32.totalorder %s34_s26, %s34_s26 }
   0x5   :  { %p185_p2 = scmp.lt.s32.totalorder %s179_s30, %s179_s30 }
   0x7   :  { %p186_p3 = por %p185_p2, %p184_p1 }
   0x9   :  { %p187_p4 = pnand %p186_p3, %p180_p0 }
   0xb   :  { %190 = shalt.err (!%p187_p4)
}
   0xc   :  { %s269_s8 = smov [#allocation6]   ;;  %s191_s9 = scalar_lea.vmem %s54_s29, 16 }
   0xd   :  { %36 = dma.vmem_to_smem %s34_s26, 16, %s269_s8, [#allocation7]  }
   0xe   :  { %p192_p5 = scmp.ne.s32.totalorder %s54_s29, %s191_s9  ;;  %p196_p6 = scmp.lt.s32.totalorder %s54_s29, %s54_s29 }
   0xf   :  { %p197_p7 = scmp.lt.s32.totalorder %s191_s9, %s191_s9 }
  0x11   :  { %p198_p8 = por %p197_p7, %p196_p6 }
  0x13   :  { %p199_p9 = pnand %p198_p8, %p192_p5 }
  0x15   :  { %202 = shalt.err (!%p199_p9)
}
  0x16   :  { %s270_s1 = smov [#allocation9]   ;;  %s23_s11 = sshll.u32 %s351_s0, 4  ;;  %s24_s11 = int_to_ptr.vmem [resolvable:$true] %s23_s11 }
  0x17   :  { %56 = dma.vmem_to_smem %s54_s29, 16, %s270_s1, [#allocation10]  }
  0x18   :  { %s43_s14 = sshll.u32 %s353_s2, 4  ;;  %s203_s15 = scalar_lea.vmem %s24_s11, 32  ;;  %s44_s14 = int_to_ptr.vmem [resolvable:$true] %s43_s14 }
  0x19   :  { %p204_p10 = scmp.ne.s32.totalorder %s24_s11, %s203_s15  ;;  %p208_p11 = scmp.lt.s32.totalorder %s24_s11, %s24_s11 }
  0x1a   :  { %p209_p12 = scmp.lt.s32.totalorder %s203_s15, %s203_s15 }
  0x1c   :  { %p210_p13 = por %p209_p12, %p208_p11 }
  0x1e   :  { %p211_p0 = pnand %p210_p13, %p204_p10 }
  0x20   :  { %214 = shalt.err (!%p211_p0)
}
  0x21   :  { %s271_s16 = smov [#allocation3]   ;;  %s215_s17 = scalar_lea.vmem %s44_s14, 32 }
  0x22   :  { %26 = dma.vmem_to_smem %s24_s11, 32, %s271_s16, [#allocation5]  }
  0x23   :  { %p216_p1 = scmp.ne.s32.totalorder %s44_s14, %s215_s17  ;;  %p220_p2 = scmp.lt.s32.totalorder %s44_s14, %s44_s14 }
  0x24   :  { %p221_p3 = scmp.lt.s32.totalorder %s215_s17, %s215_s17 }
  0x26   :  { %p222_p4 = por %p221_p3, %p220_p2 }
  0x28   :  { %p223_p5 = pnand %p222_p4, %p216_p1 }
  0x2a   :  { %226 = shalt.err (!%p223_p5)
}
  0x2b   :  { %s272_s0 = smov [#allocation8]   ;;  %s63_s19 = sshll.u32 %s355_s4, 4  ;;  %s64_s19 = int_to_ptr.vmem [resolvable:$true] %s63_s19 }
  0x2c   :  { %46 = dma.vmem_to_smem %s44_s14, 32, %s272_s0, [#allocation7]  }
  0x2d   :  { %s227_s20 = scalar_lea.vmem %s64_s19, 32  ;;  %p232_p7 = scmp.lt.s32.totalorder %s64_s19, %s64_s19 }
  0x2e   :  { %p228_p6 = scmp.ne.s32.totalorder %s64_s19, %s227_s20  ;;  %p233_p8 = scmp.lt.s32.totalorder %s227_s20, %s227_s20 }
  0x30   :  { %p234_p9 = por %p233_p8, %p232_p7 }
  0x32   :  { %p235_p10 = pnand %p234_p9, %p228_p6 }
  0x34   :  { %238 = shalt.err (!%p235_p10)
}
  0x35   :  { %s273_s21 = smov [#allocation11]  }
  0x36   :  { %66 = dma.vmem_to_smem %s64_s19, 32, %s273_s21, [#allocation10]  }
  0x37   :  { %261 = dma.done.wait [#allocation5], 32  }
  0x38   :  { %262 = vsyncadd [#allocation5], 4294967264 }
  0x39   :  { %263 = dma.done.wait [#allocation7], 48  }
  0x3a   :  { %264 = vsyncadd [#allocation7], 4294967248 }
  0x3b   :  { %265 = dma.done.wait [#allocation10], 48  }
  0x3c   :  { %266 = vsyncadd [#allocation10], 4294967248 }
  0x3d   :  { %86 = sfence }
  0x3e   :  { %s90_s22 = sld [smem:[#allocation3]]  ;;  %s165_s24 = sld [smem:[#allocation3 + $0x1]]  ;;  %v87_v0 = vld [vmem:[%s357_s6] sm:$0xff]  ;;  %v163_v1 = vld [vmem:[%s357_s6 + $0x8] sm:$0xff]  ;;  %v142_v38 = vstv %s356_s5 }
  0x3f   :  { %s164_s23 = sld [smem:[#allocation3 + $0x80]]  ;;  %s166_s25 = sld [smem:[#allocation3 + $0x81]] }
  0x40   :  { %s97_s4 = sld [smem:[#allocation6]]  ;;  %s167_s26 = sld [smem:[#allocation6 + $0x1]] }
  0x41   :  { %s112_s8 = sld [smem:[#allocation8]]  ;;  %s169_s9 = sld [smem:[#allocation8 + $0x1]] }
  0x42   :  { %s168_s1 = sld [smem:[#allocation8 + $0x80]]  ;;  %s170_s3 = sld [smem:[#allocation8 + $0x81]] }
  0x43   :  { %s119_s10 = sld [smem:[#allocation9]]  ;;  %s171_s11 = sld [smem:[#allocation9 + $0x1]] }
  0x44   :  { %v91_v2 = vstv %s90_s22  ;;  %v102_v6 = vstv %s165_s24  ;;  %s134_s6 = sld [smem:[#allocation11]]  ;;  %s274_s15 = smov [#allocation12]  }
  0x45   :  { %v94_v3 = vstv %s164_s23  ;;  %v92_v4 = vmul.f32 %v91_v2, %v87_v0  ;;  %v103_v8 = vmul.f32 %v102_v6, %v87_v0  ;;  %v105_v9 = vstv %s166_s25  ;;  %s172_s12 = sld [smem:[#allocation11 + $0x80]]  ;;  %s152_s16 = sshll.u32 %s274_s15, 4  ;;  %s153_s16 = int_to_ptr.vmem [resolvable:$true] %s152_s16 }
  0x46   :  { %v95_v5 = vmul.f32 %v163_v1, %v94_v3  ;;  %v98_v7 = vstv %s97_s4  ;;  %v106_v11 = vmul.f32 %v163_v1, %v105_v9  ;;  %v109_v12 = vstv %s167_s26  ;;  %s239_s17 = scalar_lea.vmem %s153_s16, 128  ;;  %p244_p12 = scmp.lt.s32.totalorder %s153_s16, %s153_s16 }
  0x47   :  { %v113_v15 = vstv %s112_s8  ;;  %v124_v16 = vstv %s169_s9  ;;  %p240_p11 = scmp.ne.s32.totalorder %s153_s16, %s239_s17  ;;  %p245_p13 = scmp.lt.s32.totalorder %s239_s17, %s239_s17 }
  0x48   :  { %v96_v10 = vadd.f32 %v95_v5, %v92_v4  ;;  %v107_v14 = vadd.f32 %v106_v11, %v103_v8  ;;  %v116_v19 = vstv %s168_s1  ;;  %v127_v20 = vstv %s170_s3 }
  0x49   :  { %v120_v26 = vstv %s119_s10  ;;  %v131_v27 = vstv %s171_s11  ;;  %p246_p0 = por %p245_p13, %p244_p12 }
  0x4a   :  { %v99_v13 = vadd.f32 %v98_v7, %v96_v10  ;;  %v110_v18 = vadd.f32 %v109_v12, %v107_v14  ;;  %v135_v32 = vstv %s134_s6 }
  0x4b   :  { %v138_v33 = vstv %s172_s12  ;;  %p247_p1 = pnand %p246_p0, %p240_p11 }
  0x4c   :  { %v100_v17 = vmax.f32 %v99_v13, 0.0  ;;  %v111_v21 = vmax.f32 %v110_v18, 0.0 }
  0x4e   :  { %v114_v22 = vmul.f32 %v113_v15, %v100_v17  ;;  %v125_v23 = vmul.f32 %v124_v16, %v100_v17  ;;  %v117_v24 = vmul.f32 %v116_v19, %v111_v21  ;;  %v128_v25 = vmul.f32 %v127_v20, %v111_v21 }
  0x50   :  { %v118_v28 = vadd.f32 %v117_v24, %v114_v22  ;;  %v129_v29 = vadd.f32 %v128_v25, %v125_v23 }
  0x52   :  { %v121_v30 = vadd.f32 %v120_v26, %v118_v28  ;;  %v132_v31 = vadd.f32 %v131_v27, %v129_v29 }
  0x54   :  { %v122_v34 = vmax.f32 %v121_v30, 0.0  ;;  %v133_v35 = vmax.f32 %v132_v31, 0.0 }
  0x56   :  { %v136_v36 = vmul.f32 %v135_v32, %v122_v34  ;;  %v139_v37 = vmul.f32 %v138_v33, %v133_v35 }
  0x58   :  { %v140_v39 = vadd.f32 %v139_v37, %v136_v36 }
  0x5a   :  { %v143_v40 = vadd.f32 %v142_v38, %v140_v39 }
  0x5c   :  { %v144_v41 = vmax.f32 %v143_v40, 0.0 }
  0x5e   :  { %145 = vst [vmem:[#allocation12] sm:$0xff] %v144_v41 }
  0x5f   :  { %250 = shalt.err (!%p247_p1)
}
  0x60   :  { %s251_s18 = scalar_lea.hbm %s358_s7, 128 }
  0x61   :  { %p252_p2 = scmp.ne.s32.totalorder %s358_s7, %s251_s18  ;;  %p255_p3 = scmp.lt.u32.totalorder %s251_s18, %s358_s7 }
  0x63   :  { %p257_p4 = pnand %p255_p3, %p252_p2 }
  0x65   :  { %260 = shalt.err (!%p257_p4)
}
  0x66   :  { %155 = dma.vmem_to_hbm [thread:$0]  %s153_s16, 128, %s358_s7, [#allocation4]  }
  0x67   :  { %267 = dma.done.wait [#allocation4], 128  }
  0x68   :  { %268 = vsyncadd [#allocation4], 4294967168 }
  0x69   :  { %159 = vsyncpa [#allocation4], 1 }
  0x6a   :  { %160 = vsyncpa [#allocation5], 1 }
  0x6b   :  { %161 = vsyncpa [#allocation7], 1 }
  0x6c   :  { %162 = vsyncpa [#allocation10], 1 }

</bundles_post_ra>
